<compile_context>
chip_gen: v6e
topology: v6e:2x2x1
jax: 0.10.0
libtpu: 0.0.40
codegen_flags: <defaults>
</compile_context>

<pallas_src>
import functools

import jax
import jax.numpy as jnp
from jax import lax
from jax.experimental import pallas as pl
from jax.experimental.pallas import tpu as pltpu


# ----------------------------------------------------------------------------
# Kernel 1: fused packed Q|K|V projection (Linear without bias).
# ----------------------------------------------------------------------------
def qkv_proj_kernel(x_ref, w_ref, qkv_ref):
    # x stays f32 in HBM (no extra wrapper cast pass); cast in-register for the MXU.
    x = x_ref[0].astype(jnp.bfloat16)                       # (tt, E) bf16
    qkv_ref[0] = jnp.dot(x, w_ref[...],
                         preferred_element_type=jnp.float32).astype(qkv_ref.dtype)


def qkv_projection(x, wq, wk, wv, *, seq_tile=None):
    """x: (B, T, E) f32.  Returns packed (B, T, 3H) bf16 = [q | k | v] on the last axis."""
    B, T, E = x.shape
    H = wq.shape[1]
    tt = seq_tile or min(T, 256)
    assert T % tt == 0, (T, tt)

    # Weights are tiny (E x 3H); concatenating + casting in the wrapper is negligible.
    wqkv = jnp.concatenate([wq, wk, wv], axis=1).astype(jnp.bfloat16)   # (E, 3H)

    cost = pl.CostEstimate(
        flops=2 * B * T * E * 3 * H,
        transcendentals=0,
        bytes_accessed=int(B * T * E * 4 + E * 3 * H * 2 + B * T * 3 * H * 2),
    )
    return pl.pallas_call(
        qkv_proj_kernel,
        out_shape=jax.ShapeDtypeStruct((B, T, 3 * H), jnp.bfloat16),
        grid=(B, T // tt),
        in_specs=[
            pl.BlockSpec((1, tt, E), lambda b, t: (b, t, 0)),
            pl.BlockSpec((E, 3 * H), lambda b, t: (0, 0)),
        ],
        out_specs=pl.BlockSpec((1, tt, 3 * H), lambda b, t: (b, t, 0)),
        compiler_params=pltpu.CompilerParams(
            dimension_semantics=("parallel", "parallel")),
        cost_estimate=cost,
    )(x, wqkv)


# ----------------------------------------------------------------------------
# Kernel 2: flash-style causal attention for a single head (packed qkv input).
# ----------------------------------------------------------------------------
def flash_head_kernel(qkv_q_ref, qkv_kv_ref, o_ref, m_sc, l_sc, acc_sc,
                      *, scale, tq, tk, head_size):
    qi = pl.program_id(1)
    ki = pl.program_id(2)
    nk = pl.num_programs(2)
    H = head_size

    @pl.when(ki == 0)
    def _init():
        m_sc[...] = jnp.full_like(m_sc, -jnp.inf)
        l_sc[...] = jnp.zeros_like(l_sc)
        acc_sc[...] = jnp.zeros_like(acc_sc)

    q_first = qi * tq                       # first row of this q tile
    q_last = qi * tq + (tq - 1)             # last  row of this q tile
    k_first = ki * tk                       # first col of this k tile
    k_last = ki * tk + (tk - 1)             # last  col of this k tile

    def update(apply_mask):
        q = qkv_q_ref[0][:, :H]                              # (tq, H) bf16
        kv = qkv_kv_ref[0]                                   # (tk, 3H) bf16
        k = kv[:, H:2 * H]                                   # (tk, H)
        v = kv[:, 2 * H:]                                    # (tk, H)

        # Contract the last dims directly (natural MXU form, no k transpose/relayout).
        s = lax.dot_general(q, k, (((1,), (1,)), ((), ())),
                            preferred_element_type=jnp.float32) * scale   # (tq, tk)
        if apply_mask:
            # Only built for diagonal-straddling tiles.
            row = q_first + lax.broadcasted_iota(jnp.int32, (tq, tk), 0)
            col = k_first + lax.broadcasted_iota(jnp.int32, (tq, tk), 1)
            s = jnp.where(col <= row, s, -jnp.inf)

        m_prev = m_sc[...]
        m_new = jnp.maximum(m_prev, jnp.max(s, axis=-1, keepdims=True))
        # NaN-safe: the ki == 0 tile is processed for every q-tile (column 0 is never
        # masked), so m_prev is finite after the first processed tile; at the first tile
        # m_prev = -inf and m_new is finite -> alpha = exp(-inf) = 0.
        alpha = jnp.exp(m_prev - m_new)
        p = jnp.exp(s - m_new)               # masked entries -> exp(-inf) = 0

        l_sc[...] = alpha * l_sc[...] + jnp.sum(p, axis=-1, keepdims=True)
        acc_sc[...] = alpha * acc_sc[...] + lax.dot_general(
            p.astype(v.dtype), v, (((1,), (0,)), ((), ())),
            preferred_element_type=jnp.float32)
        m_sc[...] = m_new

    # Strictly below the diagonal: no masking work at all.
    @pl.when(k_last <= q_first)
    def _below_diag():
        update(apply_mask=False)

    # Straddles the diagonal: apply the causal mask.
    @pl.when(jnp.logical_and(k_last > q_first, k_first <= q_last))
    def _on_diag():
        update(apply_mask=True)

    # Fully above the diagonal (k_first > q_last): skipped entirely (and its k/v DMA
    # is suppressed by the clamped index_map in the wrapper).

    @pl.when(ki == nk - 1)
    def _finalize():
        inv_l = pl.reciprocal(l_sc[...], approx=True)
        o_ref[0] = (acc_sc[...] * inv_l).astype(o_ref.dtype)


def causal_attention(qkv, head_size, *, q_tile=None, k_tile=None,
                     out_dtype=jnp.float32):
    """qkv: packed (B, T, 3H) bf16.  Returns (B, T, H) in out_dtype."""
    B, T, threeH = qkv.shape
    H = head_size
    assert threeH == 3 * H, (threeH, H)
    tq = q_tile or min(T, 256)      # larger q tiles amortize K/V passes (vreg-bound)
    tk = k_tile or min(T, 128)
    assert T % tq == 0 and T % tk == 0, (T, tq, tk)
    scale = float(head_size) ** -0.5

    def last_k_block(qi):
        # Last k-block that contains any unmasked column for q-tile `qi`.
        return (qi * tq + (tq - 1)) // tk

    kernel = functools.partial(flash_head_kernel, scale=scale, tq=tq, tk=tk,
                               head_size=H)
    cost = pl.CostEstimate(
        flops=2 * B * T * T * H,                 # ~half masked; keep advisory estimate
        transcendentals=B * T * T // 2,
        bytes_accessed=int(B * T * 3 * H * 2
                           + (T // tq) * (B * T * 3 * H) * 2 // 2
                           + B * T * H * jnp.dtype(out_dtype).itemsize),
    )
    return pl.pallas_call(
        kernel,
        out_shape=jax.ShapeDtypeStruct((B, T, H), out_dtype),
        grid=(B, T // tq, T // tk),
        in_specs=[
            # q rows of the packed qkv: block index depends only on (b, qi) -> fetched
            # once per q-tile (no re-DMA across the k-axis).
            pl.BlockSpec((1, tq, 3 * H), lambda b, qi, ki: (b, qi, 0)),
            # k/v rows: clamp the block index so k-tiles above the causal diagonal
            # (whose compute is predicated off) map to the previous block -> DMA skipped.
            pl.BlockSpec((1, tk, 3 * H),
                         lambda b, qi, ki: (b, jnp.minimum(ki, last_k_block(qi)), 0)),
        ],
        out_specs=pl.BlockSpec((1, tq, H), lambda b, qi, ki: (b, qi, 0)),
        scratch_shapes=[
            pltpu.VMEM((tq, 1), jnp.float32),    # running max m
            pltpu.VMEM((tq, 1), jnp.float32),    # running sum l
            pltpu.VMEM((tq, H), jnp.float32),    # output accumulator
        ],
        compiler_params=pltpu.CompilerParams(
            dimension_semantics=("parallel", "parallel", "arbitrary")),
        cost_estimate=cost,
    )(qkv, qkv)


# ----------------------------------------------------------------------------
# Head forward (Pallas) and pure-JAX f32 reference.
# ----------------------------------------------------------------------------
def head_forward(x, wq, wk, wv, head_size, max_context_length=None, dropout=0.0):
    """x: (B, T, E) f32, weights: (E, head_size).  Returns (B, T, head_size) f32."""
    # Dropout is identity in eval mode / dropout=0.0.
    # max_context_length only matters via T <= max_context_length (tril-crop semantics).
    qkv = qkv_projection(x, wq, wk, wv)
    # out_dtype=f32 preserves module semantics; pass bf16 for lane-denser stores in prod.
    return causal_attention(qkv, head_size, out_dtype=jnp.float32)


def reference_forward(x, wq, wk, wv, head_size):
    q = x @ wq
    k = x @ wk
    v = x @ wv
    T = x.shape[1]
    att = jnp.einsum("btd,bsd->bts", q, k) * head_size ** -0.5
    mask = jnp.tril(jnp.ones((T, T), dtype=bool))
    att = jnp.where(mask, att, -jnp.inf)
    att = jax.nn.softmax(att, axis=-1)
    return jnp.einsum("bts,bsd->btd", att, v)


# ----------------------------------------------------------------------------
if __name__ == "__main__":
    B, T = 2, 8
    EMB = 32
    HEAD = 16
    MAX_CTX = 16          # causal mask equivalent to tril(ones(MAX_CTX, MAX_CTX))[:T, :T]
    DROPOUT = 0.0

    key = jax.random.PRNGKey(0)
    kx, kq, kk, kv = jax.random.split(key, 4)
    x = jax.random.normal(kx, (B, T, EMB), dtype=jnp.float32)
    wq = 0.1 * jax.random.normal(kq, (EMB, HEAD), dtype=jnp.float32)
    wk = 0.1 * jax.random.normal(kk, (EMB, HEAD), dtype=jnp.float32)
    wv = 0.1 * jax.random.normal(kv, (EMB, HEAD), dtype=jnp.float32)

    out = head_forward(x, wq, wk, wv, HEAD, MAX_CTX, DROPOUT)
    out = jax.block_until_ready(out)

    ref = jax.block_until_ready(reference_forward(x, wq, wk, wv, HEAD))
    assert out.shape == (B, T, HEAD), out.shape
    # bf16 matmul inputs + approx reciprocal -> loosened tolerance vs f32 reference.
    assert jnp.allclose(out, ref, rtol=3e-2, atol=3e-2), \
        float(jnp.max(jnp.abs(out - ref)))

    print("KERNEL_OK")
</pallas_src>

<mosaic_0001>
module attributes {stable_mosaic.version = 11 : i64} {
  func.func @qkv_proj_kernel(%arg0: i32, %arg1: i32, %arg2: memref<1x8x32xf32, #tpu.memory_space<vmem>>, %arg3: memref<32x48xbf16, #tpu.memory_space<vmem>>, %arg4: memref<1x8x48xbf16, #tpu.memory_space<vmem>>) attributes {dimension_semantics = [#tpu.dimension_semantics<parallel>, #tpu.dimension_semantics<parallel>], iteration_bounds = array<i64: 2, 1>, scalar_prefetch = 0 : i64, scratch_operands = 0 : i64, tpu.core_type = #tpu.core_type<tc>, window_params = [{transform_indices = @transform_0, window_bounds = array<i64: 1, 8, 32>}, {pipeline_mode = #tpu.pipeline_mode<synchronous>, transform_indices = @transform_1, window_bounds = array<i64: 32, 48>}, {transform_indices = @transform_2, window_bounds = array<i64: 1, 8, 48>}]} {
    %c0 = arith.constant 0 : index
    %c0_0 = arith.constant 0 : index
    %c0_1 = arith.constant 0 : index
    %0 = vector.load %arg2[%c0, %c0_0, %c0_1] : memref<1x8x32xf32, #tpu.memory_space<vmem>>, vector<1x8x32xf32>
    %1 = vector.shape_cast %0 : vector<1x8x32xf32> to vector<8x32xf32>
    %2 = arith.truncf %1 : vector<8x32xf32> to vector<8x32xbf16>
    %c0_2 = arith.constant 0 : index
    %c0_3 = arith.constant 0 : index
    %3 = vector.load %arg3[%c0_2, %c0_3] : memref<32x48xbf16, #tpu.memory_space<vmem>>, vector<32x48xbf16>
    %cst = arith.constant dense<0.000000e+00> : vector<8x48xf32>
    %4 = tpu.matmul %2, %3, %cst {dimension_numbers = #tpu.dot_dimension_numbers<[1], [0], [0], [1], [0, 0, 1, 1], [], []>} : vector<8x32xbf16>, vector<32x48xbf16>, vector<8x48xf32> -> vector<8x48xf32>
    %5 = arith.truncf %4 : vector<8x48xf32> to vector<8x48xbf16>
    %c0_4 = arith.constant 0 : index
    %c0_5 = arith.constant 0 : index
    %c0_6 = arith.constant 0 : index
    %6 = vector.load %arg4[%c0_4, %c0_5, %c0_6] : memref<1x8x48xbf16, #tpu.memory_space<vmem>>, vector<1x8x48xbf16>
    %7 = vector.shape_cast %6 : vector<1x8x48xbf16> to vector<8x48xbf16>
    %8 = vector.shape_cast %5 : vector<8x48xbf16> to vector<1x8x48xbf16>
    tpu.vector_store %arg4[%c0_4, %c0_5, %c0_6], %8 {strides = array<i32>} : memref<1x8x48xbf16, #tpu.memory_space<vmem>>, vector<1x8x48xbf16>,
    return
  }
  func.func @transform_0(%arg0: i32, %arg1: i32) -> (i32, i32, i32) {
    %c0_i32 = arith.constant 0 : i32
    %c0_i32_0 = arith.constant 0 : i32
    return %arg0, %arg1, %c0_i32 : i32, i32, i32
  }
  func.func @transform_1(%arg0: i32, %arg1: i32) -> (i32, i32) {
    %c0_i32 = arith.constant 0 : i32
    %c0_i32_0 = arith.constant 0 : i32
    %c0_i32_1 = arith.constant 0 : i32
    return %c0_i32, %c0_i32_0 : i32, i32
  }
  func.func @transform_2(%arg0: i32, %arg1: i32) -> (i32, i32, i32) {
    %c0_i32 = arith.constant 0 : i32
    %c0_i32_0 = arith.constant 0 : i32
    return %arg0, %arg1, %c0_i32 : i32, i32, i32
  }
}

</mosaic_0001>

<bundles_post_ra>
// kernel: tpu_custom_call.1
= control target key start
LH: loop header
LB: loop body
LE: loop exit
PB: predicated region body
PF: predicated region fallthrough
CT: control target
= control target key end

     0   :  { %7 = vsyncpa [#allocation3], 0  ;;  %s812_s0 = inlined_call_operand.hbm [shape: f32[2,8,32], index: 0, kind: input, shape index: {}]   ;;  %s813_s1 = inlined_call_operand.hbm [shape: bf16[32,48], index: 1, kind: input, shape index: {}]   ;;  %s814_s2 = inlined_call_operand.hbm [shape: bf16[2,8,48], index: 2, kind: output, shape index: {}]  }
   0x1   :  { %9 = vsyncpa [#allocation3 + $0x1], 0 }
   0x2   :  { %10 = vsyncpa [#allocation6], 0 }
   0x3   :  { %11 = vsyncpa [#allocation4], 0 }
   0x4   :  { %13 = vsyncpa [#allocation4 + $0x1], 0  ;;  %s632_s9 = smov 0   ;;  %s634_s10 = smov 0  }
   0x5   :  { %s636_s11 = smov 0   ;;  %s638_s12 = smov 0  }
   0x6   :  { %s640_s13 = smov 0   ;;  %s642_s14 = smov 0  }
   0x7 LB: > { %s362_s15 = sadd.s32 4294967295, %s608_s14   ;;  %s363_s16 = sadd.s32 4294967294, %s608_s14   ;;  %s608_s14 = sphi %s642_s14, %s19_s14   ;;  %s604_s13 = sphi %s640_s13, %s832_s13   ;;  %s600_s12 = sphi %s638_s12, %s831_s12   ;;  %s596_s11 = sphi %s636_s11, %s830_s11   ;;  %s592_s10 = sphi %s634_s10, %s829_s10   ;;  %s588_s9 = sphi %s632_s9, %s828_s9  }
   0x8   : > { %p53_p0 = scmp.ne.s32.totalorder %s592_s10, %s588_s9  ;;  %p666_p1 = scmp.eq.s32.totalorder %s362_s15, 0 }
   0x9   : > { %p670_p2 = scmp.eq.s32.totalorder %s362_s15, 1  ;;  %p106_p3 = scmp.eq.s32.totalorder %s363_s16, 1 }
   0xa   : > { %p676_p4 = por %p666_p1, %p53_p0  ;;  %p364_p5 = scmp.ge.s32.totalorder %s608_s14, 1 }
   0xb   : > { %p681_p6 = por %p106_p3, %p53_p0  ;;  %p113_p7 = scmp.lt.s32.totalorder %s608_s14, 3 }
   0xc   : > { %s818_s19 = scalar_select %p676_p4, 1, 0 }
   0xd   : > { %s819_s20 = scalar_select %p681_p6, 1, 0 }
   0xe   : > { %p686_p8 = pnand %p364_p5, %p113_p7  ;;  %s610_s22 = smov [#allocation5]  }
   0xf   : > { %s125_s23 = sshll.u32 %s610_s22, 4  ;;  %s31_s25 = sadd.s32 1, %s604_s13  ;;  %s126_s23 = int_to_ptr.vmem [resolvable:$true] %s125_s23 }
  0x10   : > { %p399_p9 = pneg %p686_p8  ;;  %s481_s26 = scalar_lea.vmem %s126_s23, 256 }
  0x11   : > { %p482_p13 = scmp.ne.s32.totalorder %s126_s23, %s481_s26  ;;  %p489_p5 = scmp.lt.s32.totalorder %s126_s23, %s126_s23 }
  0x12   : > { %p695_p11 = pnand %p399_p9, %p666_p1  ;;  %p490_p7 = scmp.lt.s32.totalorder %s481_s26, %s481_s26 }
  0x14   : > { %p472_p12 = pneg %p695_p11  ;;  %p491_p6 = por %p490_p7, %p489_p5 }
  0x16   : > { %p484_p0 = pnand %p482_p13, %p472_p12 }
  0x18   : > { %p485_p3 = pneg %p484_p0 }
  0x1a   : > { %p492_p4 = pnand %p491_p6, %p485_p3 }
  0x1c   : > { %495 = shalt.err (!%p492_p4)
}
  0x1d   : > { %s611_s27 = smov 64   ;;  %s612_s28 = smov 4  }
  0x1e   : > { %402 = dma.hbm_to_vmem [thread:$0]  (!%p695_p11), %s813_s1, 256, %s126_s23, [#allocation6], %s611_s27, %s611_s27, %s612_s28  }
  0x1f   : > { %p33_p6 = scmp.ge.s32.totalorder %s31_s25, 2  ;;  %s40_s3 = sadd.s32 1, %s596_s11 }
  0x20   : > { %p47_p4 = scmp.ne.s32.totalorder %s596_s11, %s592_s10  ;;  %p48_p9 = scmp.eq.s32.totalorder %s608_s14, 0 }
  0x21   : > { %s834_s25 = smov (%p33_p6, %s31_s25), 0  ;;  %p412_p0 = scmp.lt.s32.totalorder %s608_s14, 2 }
  0x22   : > { %p713_p12 = por %p48_p9, %p47_p4  ;;  %p719_p13 = por %p670_p2, %p47_p4 }
  0x23   : > { %s35_s6 = ssub.s32 %s604_s13, %s834_s25  ;;  %s139_s7 = sand.u32 1, %s596_s11  }
  0x24   : > { %p38_p11 = scmp.eq.s32.totalorder %s35_s6, 0  ;;  %s367_s8 = sshll.u32 %s139_s7, 3 }
  0x25   : > { %s368_s16 = sshll.u32 %s604_s13, 7  ;;  %s143_s26 = scalar_lea.vmem [#allocation2], %s367_s8 }
  0x26   : > { %s728_s15 = scalar_select %p38_p11, %s596_s11, %s40_s3  }
  0x27   : > { %s149_s24 = scalar_lea.hbm %s812_s0, %s368_s16  ;;  %s151_s27 = sshll.u32 %s143_s26, 4  ;;  %s152_s27 = int_to_ptr.vmem [resolvable:$true] %s151_s27 }
  0x28   : > { %p736_p2 = pnand %p412_p0, %p713_p12  ;;  %s140_s28 = scalar_lea.sflag [#allocation3], %s139_s7 }
  0x29   : > { %s509_s29 = scalar_lea.vmem %s152_s27, 128  ;;  %s613_s30 = smov [#allocation2]  }
  0x2a   : > { %p498_p3 = pneg %p736_p2  ;;  %p510_p5 = scmp.ne.s32.totalorder %s152_s27, %s509_s29 }
  0x2b   : > { %s514_s3 = sshll.u32 %s613_s30, 4  ;;  %s515_s3 = int_to_ptr.vmem [resolvable:$false] %s514_s3 }
  0x2c   : > { %p512_p7 = pnand %p510_p5, %p498_p3  ;;  %s516_s6 = scalar_lea.vmem %s515_s3, 256 }
  0x2d   : > { %p517_p4 = scmp.lt.s32.totalorder %s152_s27, %s515_s3  ;;  %p518_p9 = scmp.lt.s32.totalorder %s516_s6, %s509_s29 }
  0x2e   : > { %p513_p6 = pneg %p512_p7 }
  0x2f   : > { %p519_p11 = por %p518_p9, %p517_p4 }
  0x31   : > { %p520_p10 = pnand %p519_p11, %p513_p6 }
  0x33   : > { %523 = shalt.err (!%p520_p10)
}
  0x34   : > { %406 = dma.hbm_to_vmem [thread:$0]  (!%p736_p2), %s149_s24, 128, %s152_s27, %s140_s28  }
  0x35   : > { %160 = sbr.rel (%p686_p8) target bundleno = 279 (0x117), region = 28  ;;  %s747_s4 = sand.u32 (!%p686_p8), 1, %s592_s10  }
  0x36   : > { %s370_s7 = sshll.u32 (!%p686_p8), %s747_s4, 3  ;;  %s163_s8 = scalar_lea.sflag (!%p686_p8), [#allocation3], %s747_s4 }
  0x37   : > { %s166_s16 = scalar_lea.vmem (!%p686_p8), [#allocation2], %s370_s7  ;;  %p825_p12 = scmp.ne.s32.totalorder (!%p686_p8), %s818_s19, 0 }
  0x3a   : > { %575 = dma.done.wait (%p825_p12), %s163_s8, 128  }
  0x3b   : > { %577 = vsyncadd (%p825_p12), %s163_s8, 4294967168 }
  0x3c   : > { %579 = dma.done.wait (%p666_p1), [#allocation6], 256  }
  0x3d   : > { %581 = vsyncadd (%p666_p1), [#allocation6], 4294967040  ;;  %v614_v0 = vmov 0.0   ;;  %vm615_vm0 = vmmov 0   ;;  %v468_v1 = vld [vmem:[#allocation5 + $0x8] sm:$0xff]   ;;  %v469_v2 = vld [vmem:[#allocation5] sm:$0xff]  }
  0x3e   : > { %383 = vmatprep.subr.bf16.mxu0 %v614_v0  ;;  %387 = vmatprep.mubr.msk.bf16.mxu0 %vm615_vm0, %v614_v0  ;;  %v192_v3 = vld [vmem:[%s166_s16] sm:$0xff]  ;;  %vm210_vm1 = vcmask 261120   ;;  %s372_s19 = sshll.u32 %s747_s4, 2  ;;  %s377_s17 = sshll.u32 %s600_s12, 6  ;;  %vm255_vm2 = vcmask 388096  }
  0x3f   : > { %384 = vmatpush3.bf16.msra.mxu0 %v468_v1  ;;  %v193_v4 = vpack.c.bf16 %v192_v3, %v192_v3  ;;  %s190_s21 = scalar_lea.vmem [#allocation7], %s372_s19  ;;  %s764_s26 = scalar_lea.hbm %s814_s2, %s377_s17 }
  0x40   : > { %385 = vmatprep.subr.bf16.mxu0 %v614_v0  ;;  %s272_s22 = sshll.u32 %s190_s21, 4  ;;  %s258_s27 = scalar_lea.sflag [#allocation4], %s747_s4  ;;  %s766_s22 = int_to_ptr.vmem [resolvable:$true] %s272_s22 }
  0x41   : > { %s524_s12 = scalar_lea.vmem %s766_s22, 64  ;;  %s616_s18 = smov [#allocation7]  }
  0x42   : > { %p525_p1 = scmp.ne.s32.totalorder %s766_s22, %s524_s12  ;;  %s528_s28 = sshll.u32 %s616_s18, 4  ;;  %s529_s28 = int_to_ptr.vmem [resolvable:$false] %s528_s28 }
  0x43   : > { %386 = vmatpush3.bf16.msra.mxu0 %v469_v2  ;;  %s530_s29 = scalar_lea.vmem %s529_s28, 128  ;;  %p531_p0 = scmp.lt.s32.totalorder %s766_s22, %s529_s28 }
  0x44   : > { %p526_p8 = pnand %p525_p1, %p719_p13  ;;  %p532_p2 = scmp.lt.s32.totalorder %s530_s29, %s524_s12 }
  0x46   : > { %388 = vmatmul.mubr.msk.bf16.vlgmr.msra.gmra.mxu0 %vm210_vm1, %v193_v4  ;;  %p527_p10 = pneg %p526_p8  ;;  %p533_p3 = por %p532_p2, %p531_p0 }
  0x48   : > { %p534_p5 = pnand %p533_p3, %p527_p10 }
 0x106   : > { %v248_v5 = vpop.f32.mrf.mxu0 }
 0x107   : > { %v254_v6 = vpack.c.bf16 %v248_v5, %v248_v5 }
 0x108   : > { %v389_v7 = vpop.f32.mrf.mxu0 }
 0x109   : > { %256 = vst.msk [vmem:[%s190_s21] sm:$0xf] %vm255_vm2, %v254_v6 }
 0x10a   : > { %v251_v8 = vpop.f32.mrf.mxu0 }
 0x10b   : > { %537 = shalt.err (!%p534_p5)
}
 0x10c   : > { %s538_s30 = scalar_lea.hbm %s764_s26, 64  ;;  %s542_s4 = scalar_lea.hbm %s814_s2, 128 }
 0x10d   : > { %p539_p7 = scmp.ne.s32.totalorder %s764_s26, %s538_s30  ;;  %p543_p9 = scmp.lt.s32.totalorder %s764_s26, %s814_s2 }
 0x10e   : > { %p544_p11 = scmp.lt.s32.totalorder %s542_s4, %s538_s30 }
 0x10f   : > { %p540_p6 = pnand %p539_p7, %p719_p13 }
 0x110   : > { %p545_p12 = por %p544_p11, %p543_p9 }
 0x111   : > { %p541_p4 = pneg %p540_p6 }
 0x113   : > { %p546_p1 = pnand %p545_p12, %p541_p4 }
 0x115   : > { %549 = shalt.err (!%p546_p1)
}
 0x116   : > { %397 = dma.vmem_to_hbm [thread:$0]  (%p719_p13), %s766_s22, 64, %s764_s26, %s258_s27   ;;  %v390_v9 = vpop.f32.mrf.mxu0 }
 0x117 PF: > { %s284_s16 = sand.u32 1, %s588_s9   ;;  %p826_p8 = scmp.ne.s32.totalorder %s819_s20, 0 }
 0x118   : > { %p827_p10 = scmp.ge.s32.totalorder %s608_s14, 2  ;;  %s285_s19 = scalar_lea.sflag [#allocation4], %s284_s16 }
 0x11a   : > { %p408_p0 = pnand %p827_p10, %p826_p8 }
 0x11c   : > { %p409_p2 = pneg %p408_p0 }
 0x11e   : > { %583 = dma.done.wait (%p409_p2), %s285_s19, 64  }
 0x11f   : > { %585 = vsyncadd (%p409_p2), %s285_s19, 4294967232  ;;  %s19_s14 = sadd.s32 1, %s608_s14   ;;  %s828_s9 = smov %s592_s10 }
 0x120   : > { %p16_p3 = scmp.ge.s32.totalorder %s19_s14, 4   ;;  %s829_s10 = smov %s596_s11 }
 0x121   : > { %s830_s11 = smov %s728_s15  ;;  %s831_s12 = smov %s604_s13 }
 0x122   : > { %s832_s13 = smov %s834_s25  ;;  %18 = sbr.rel (!%p16_p3) target bundleno = 7 (0x7), region = 77 }
 0x127   :  { %290 = vsyncpa [#allocation3], 1 }
 0x128   :  { %292 = vsyncpa [#allocation3 + $0x1], 1 }
 0x129   :  { %293 = vsyncpa [#allocation6], 1 }
 0x12a   :  { %294 = vsyncpa [#allocation4], 1 }
 0x12b   :  { %296 = vsyncpa [#allocation4 + $0x1], 1 }

</bundles_post_ra>
